<compile_context>
chip_gen: v7x
topology: tpu7x:2x2x1
jax: 0.10.0
libtpu: 0.0.40
codegen_flags: <defaults>
</compile_context>

<pallas_src>
import functools

import jax
import jax.numpy as jnp
from jax import lax
from jax.experimental import pallas as pl
from jax.experimental.pallas import tpu as pltpu

EPS = 1e-8  # matches torch.nn.functional.cosine_similarity eps
_VMEM_LIMIT = 32 * 1024 * 1024


def _pick_block(n, cap):
    b = cap
    while b >= 8:
        if b <= n and n % b == 0:
            return b
        b //= 2
    return n  # full extent fallback (block == full dim is always legal)


# ---------------------------------------------------------------------------
# Kernel 1 (fused): for both views, y = L2-normalize(relu(x @ W1 + b1) @ W2 + b2);
# the snd features are additionally scaled by 1/tau. Outputs are bf16.
# ---------------------------------------------------------------------------
def _mlp_norm_kernel(img_ref, snd_ref, w1_ref, b1_ref, w2_ref, b2_ref,
                     img_out_ref, snd_out_ref, *, inv_tau):
    tb = img_ref.shape[0]
    # One (2*tb, 128) MXU pass covers both views; weights stay resident in VMEM.
    x = jnp.concatenate([img_ref[...], snd_ref[...]], axis=0).astype(jnp.bfloat16)
    h = jnp.dot(x, w1_ref[...], preferred_element_type=jnp.float32) + b1_ref[...]
    h = jnp.maximum(h, 0.0)
    y = jnp.dot(h.astype(jnp.bfloat16), w2_ref[...],
                preferred_element_type=jnp.float32) + b2_ref[...]
    # Cosine-similarity normalization (equivalent to dividing by max(||y||, EPS)).
    inv_norm = lax.rsqrt(jnp.maximum(jnp.sum(y * y, axis=1, keepdims=True),
                                     EPS * EPS))
    y = y * inv_norm
    img_out_ref[...] = y[:tb].astype(img_out_ref.dtype)
    # Fold 1/tau into the snd features once (O(B*128)) instead of scaling the
    # O(B^2) similarity tile in the loss kernel.
    snd_out_ref[...] = (y[tb:] * inv_tau).astype(snd_out_ref.dtype)


# ---------------------------------------------------------------------------
# Kernel 2: per-row loss contributions  lse_i(sim[i,k]) - sim[k,k]
# computed on S = sim.T so the reduction runs over the lane axis.
# ---------------------------------------------------------------------------
def _loss_kernel(snd_ref, img_ref, out_ref, *, inv_tau, col_block):
    tb, d = snd_ref.shape
    b = img_ref.shape[0]
    snd = snd_ref[...]                       # [tb, d] bf16, pre-scaled by 1/tau
    n_col = b // col_block

    # Column-tiled similarity with a constant logsumexp shift: rows are unit-norm
    # and snd carries the 1/tau scale, so s <= 1/tau always (keep the constant
    # shift rather than none in case tau is small).
    def body(c, acc):
        start = pl.multiple_of(c * col_block, col_block)
        img_tile = img_ref[pl.ds(start, col_block), :]              # [tc, d] bf16
        s = lax.dot_general(snd, img_tile,
                            dimension_numbers=(((1,), (1,)), ((), ())),
                            preferred_element_type=jnp.float32)     # [tb, tc] = sim.T tile
        return acc + jnp.sum(jnp.exp(s - inv_tau), axis=1, keepdims=True)

    acc = lax.fori_loop(0, n_col, body, jnp.zeros((tb, 1), jnp.float32))
    lse = inv_tau + jnp.log(acc)                                     # [tb, 1]

    # Diagonal sim[k,k]: width-128 rowwise dot against the aligned img rows,
    # sliced out of the resident copy (no extra DMA, no [tb,B] iota mask).
    j = pl.program_id(0)
    row0 = pl.multiple_of(j * tb, tb)
    img_diag = img_ref[pl.ds(row0, tb), :]
    diag = jnp.sum(snd.astype(jnp.float32) * img_diag.astype(jnp.float32),
                   axis=1, keepdims=True)                            # [tb, 1]

    # Per-row partials; summed and divided by B in the wrapper. "parallel" grid
    # axis -> megacore-shardable on v7x (no sequential accumulator needed).
    out_ref[...] = lse - diag


def simclr_loss(img, snd, params, tau=0.2, block_rows=None, col_block=None):
    """img, snd: [B,128] f32; params = (w1[128,512], b1[1,512], w2[512,128], b2[1,128])
    (weights already in [in, out] layout, i.e. transposed torch Linear weights)."""
    w1, b1, w2, b2 = params
    assert img.shape == snd.shape and img.ndim == 2
    assert img.shape[1] == w1.shape[0]
    n, d_in = img.shape
    d_hid = w1.shape[1]
    d_out = w2.shape[1]

    tb = block_rows or _pick_block(n, 256)   # >=256 rows in production; full B if small
    tc = col_block or _pick_block(n, 512)    # bounds the live [tb, tc] similarity tile
    assert n % tb == 0 and n % tc == 0
    inv_tau = float(1.0 / tau)

    # bf16 MXU operands (f32 accumulate); cast weights once in the wrapper.
    w1b = w1.astype(jnp.bfloat16)
    w2b = w2.astype(jnp.bfloat16)

    img_n, snd_n = pl.pallas_call(
        functools.partial(_mlp_norm_kernel, inv_tau=inv_tau),
        out_shape=(jax.ShapeDtypeStruct((n, d_out), jnp.bfloat16),
                   jax.ShapeDtypeStruct((n, d_out), jnp.bfloat16)),
        grid=(n // tb,),
        in_specs=[
            pl.BlockSpec((tb, d_in), lambda i: (i, 0)),
            pl.BlockSpec((tb, d_in), lambda i: (i, 0)),
            pl.BlockSpec((d_in, d_hid), lambda i: (0, 0)),   # resident weights
            pl.BlockSpec((1, d_hid), lambda i: (0, 0)),
            pl.BlockSpec((d_hid, d_out), lambda i: (0, 0)),
            pl.BlockSpec((1, d_out), lambda i: (0, 0)),
        ],
        out_specs=[pl.BlockSpec((tb, d_out), lambda i: (i, 0)),
                   pl.BlockSpec((tb, d_out), lambda i: (i, 0))],
        compiler_params=pltpu.CompilerParams(
            dimension_semantics=("parallel",),
            vmem_limit_bytes=_VMEM_LIMIT),
    )(img, snd, w1b, b1, w2b, b2)

    per_row = pl.pallas_call(
        functools.partial(_loss_kernel, inv_tau=inv_tau, col_block=tc),
        out_shape=jax.ShapeDtypeStruct((n, 1), jnp.float32),
        grid=(n // tb,),
        in_specs=[
            pl.BlockSpec((tb, d_out), lambda j: (j, 0)),   # snd_n row block
            pl.BlockSpec((n, d_out), lambda j: (0, 0)),    # img_n resident (bf16)
        ],
        out_specs=pl.BlockSpec((tb, 1), lambda j: (j, 0)),
        compiler_params=pltpu.CompilerParams(
            dimension_semantics=("parallel",),
            vmem_limit_bytes=_VMEM_LIMIT),
    )(snd_n, img_n)

    return jnp.sum(per_row) * (1.0 / n)


# ---------------------------------------------------------------------------
# Pure-JAX f32 reference mirroring the PyTorch forward.
# ---------------------------------------------------------------------------
def _reference_loss(img, snd, params, tau=0.2):
    w1, b1, w2, b2 = params

    def g(x):
        h = jnp.maximum(jnp.dot(x, w1) + b1, 0.0)
        return jnp.dot(h, w2) + b2

    gi, gs = g(img), g(snd)
    gi = gi / jnp.maximum(jnp.linalg.norm(gi, axis=1, keepdims=True), EPS)
    gs = gs / jnp.maximum(jnp.linalg.norm(gs, axis=1, keepdims=True), EPS)
    sim = jnp.dot(gi, gs.T) / tau              # sim[i, j] = cos(img_i, snd_j) / tau
    ls0 = jax.nn.log_softmax(sim, axis=0)
    return -jnp.mean(jnp.diag(ls0))


if __name__ == "__main__":
    key = jax.random.PRNGKey(0)
    k_img, k_noise, k_w1, k_b1, k_w2, k_b2 = jax.random.split(key, 6)

    B, D_IN, D_HID, D_OUT = 32, 128, 512, 128   # feature dims fixed by the module's g
    TAU = 0.2

    img = jax.random.normal(k_img, (B, D_IN), dtype=jnp.float32)
    # Second view: correlated with img (SimCLR positive pairs).
    snd = img + 0.1 * jax.random.normal(k_noise, (B, D_IN), dtype=jnp.float32)

    w1 = jax.random.normal(k_w1, (D_IN, D_HID), dtype=jnp.float32) * (D_IN ** -0.5)
    b1 = jax.random.normal(k_b1, (1, D_HID), dtype=jnp.float32) * 0.01
    w2 = jax.random.normal(k_w2, (D_HID, D_OUT), dtype=jnp.float32) * (D_HID ** -0.5)
    b2 = jax.random.normal(k_b2, (1, D_OUT), dtype=jnp.float32) * 0.01
    params = (w1, b1, w2, b2)

    fn = jax.jit(simclr_loss, static_argnames=("tau", "block_rows", "col_block"))
    ref = jax.block_until_ready(_reference_loss(img, snd, params, tau=TAU))

    # Default tiling (single full-batch block at this small demo scale).
    loss = jax.block_until_ready(fn(img, snd, params, tau=TAU))
    assert bool(jnp.isfinite(loss)), "kernel produced non-finite loss"
    # Tolerance tightened vs. 1e-1 (bf16 MXU operands bound the deviation well below this).
    assert abs(float(loss) - float(ref)) < 5e-2, (float(loss), float(ref))

    # Multi-row-block / multi-column-tile path (correctness exercise only — not a
    # performance configuration; production uses >=256-row tiles).
    loss2 = jax.block_until_ready(fn(img, snd, params, tau=TAU,
                                     block_rows=16, col_block=16))
    assert bool(jnp.isfinite(loss2)), "kernel produced non-finite loss"
    assert abs(float(loss2) - float(ref)) < 5e-2, (float(loss2), float(ref))

    print("KERNEL_OK")
</pallas_src>

<mosaic_0001>
module attributes {stable_mosaic.version = 11 : i64} {
  func.func @_mlp_norm_kernel(%arg0: i32, %arg1: memref<32x128xf32, #tpu.memory_space<vmem>>, %arg2: memref<32x128xf32, #tpu.memory_space<vmem>>, %arg3: memref<128x512xbf16, #tpu.memory_space<vmem>>, %arg4: memref<1x512xf32, #tpu.memory_space<vmem>>, %arg5: memref<512x128xbf16, #tpu.memory_space<vmem>>, %arg6: memref<1x128xf32, #tpu.memory_space<vmem>>, %arg7: memref<32x128xbf16, #tpu.memory_space<vmem>>, %arg8: memref<32x128xbf16, #tpu.memory_space<vmem>>) attributes {dimension_semantics = [#tpu.dimension_semantics<parallel>], iteration_bounds = array<i64: 1>, scalar_prefetch = 0 : i64, scratch_operands = 0 : i64, tpu.core_type = #tpu.core_type<tc>, window_params = [{transform_indices = @transform_0, window_bounds = array<i64: 32, 128>}, {transform_indices = @transform_1, window_bounds = array<i64: 32, 128>}, {pipeline_mode = #tpu.pipeline_mode<synchronous>, transform_indices = @transform_2, window_bounds = array<i64: 128, 512>}, {pipeline_mode = #tpu.pipeline_mode<synchronous>, transform_indices = @transform_3, window_bounds = array<i64: 1, 512>}, {pipeline_mode = #tpu.pipeline_mode<synchronous>, transform_indices = @transform_4, window_bounds = array<i64: 512, 128>}, {pipeline_mode = #tpu.pipeline_mode<synchronous>, transform_indices = @transform_5, window_bounds = array<i64: 1, 128>}, {transform_indices = @transform_6, window_bounds = array<i64: 32, 128>}, {transform_indices = @transform_7, window_bounds = array<i64: 32, 128>}]} {
    %c0 = arith.constant 0 : index
    %c0_0 = arith.constant 0 : index
    %0 = vector.load %arg1[%c0, %c0_0] : memref<32x128xf32, #tpu.memory_space<vmem>>, vector<32x128xf32>
    %c0_1 = arith.constant 0 : index
    %c0_2 = arith.constant 0 : index
    %1 = vector.load %arg2[%c0_1, %c0_2] : memref<32x128xf32, #tpu.memory_space<vmem>>, vector<32x128xf32>
    %2 = tpu.concatenate %0, %1 in 0 : vector<32x128xf32>, vector<32x128xf32> -> vector<64x128xf32>
    %3 = arith.truncf %2 : vector<64x128xf32> to vector<64x128xbf16>
    %c0_3 = arith.constant 0 : index
    %c0_4 = arith.constant 0 : index
    %4 = vector.load %arg3[%c0_3, %c0_4] : memref<128x512xbf16, #tpu.memory_space<vmem>>, vector<128x512xbf16>
    %cst = arith.constant dense<0.000000e+00> : vector<64x512xf32>
    %5 = tpu.matmul %3, %4, %cst {dimension_numbers = #tpu.dot_dimension_numbers<[1], [0], [0], [1], [0, 0, 1, 1], [], []>} : vector<64x128xbf16>, vector<128x512xbf16>, vector<64x512xf32> -> vector<64x512xf32>
    %c0_5 = arith.constant 0 : index
    %c0_6 = arith.constant 0 : index
    %6 = vector.load %arg4[%c0_5, %c0_6] : memref<1x512xf32, #tpu.memory_space<vmem>>, vector<1x512xf32>
    %7 = vector.broadcast %6 : vector<1x512xf32> to vector<64x512xf32>
    %8 = arith.addf %5, %7 : vector<64x512xf32>
    %cst_7 = arith.constant 0.000000e+00 : f32
    %9 = vector.broadcast %cst_7 : f32 to vector<64x512xf32>
    %10 = arith.maximumf %8, %9 : vector<64x512xf32>
    %11 = arith.truncf %10 : vector<64x512xf32> to vector<64x512xbf16>
    %c0_8 = arith.constant 0 : index
    %c0_9 = arith.constant 0 : index
    %12 = vector.load %arg5[%c0_8, %c0_9] : memref<512x128xbf16, #tpu.memory_space<vmem>>, vector<512x128xbf16>
    %cst_10 = arith.constant dense<0.000000e+00> : vector<64x128xf32>
    %13 = tpu.matmul %11, %12, %cst_10 {dimension_numbers = #tpu.dot_dimension_numbers<[1], [0], [0], [1], [0, 0, 1, 1], [], []>} : vector<64x512xbf16>, vector<512x128xbf16>, vector<64x128xf32> -> vector<64x128xf32>
    %c0_11 = arith.constant 0 : index
    %c0_12 = arith.constant 0 : index
    %14 = vector.load %arg6[%c0_11, %c0_12] : memref<1x128xf32, #tpu.memory_space<vmem>>, vector<1x128xf32>
    %15 = vector.broadcast %14 : vector<1x128xf32> to vector<64x128xf32>
    %16 = arith.addf %13, %15 : vector<64x128xf32>
    %17 = arith.mulf %16, %16 : vector<64x128xf32>
    %cst_13 = arith.constant dense<0.000000e+00> : vector<64xf32>
    %18 = vector.multi_reduction <add>, %17, %cst_13 [1] : vector<64x128xf32> to vector<64xf32>
    %19 = vector.shape_cast %18 : vector<64xf32> to vector<64x1xf32>
    %cst_14 = arith.constant 1.000000e-16 : f32
    %20 = vector.broadcast %cst_14 : f32 to vector<64x1xf32>
    %21 = arith.maximumf %19, %20 : vector<64x1xf32>
    %22 = math.rsqrt %21 : vector<64x1xf32>
    %23 = vector.broadcast %22 : vector<64x1xf32> to vector<64x128xf32>
    %24 = arith.mulf %16, %23 : vector<64x128xf32>
    %25 = vector.extract_strided_slice %24 {offsets = [0, 0], sizes = [32, 128], strides = [1, 1]} : vector<64x128xf32> to vector<32x128xf32>
    %26 = arith.truncf %25 : vector<32x128xf32> to vector<32x128xbf16>
    %c0_15 = arith.constant 0 : index
    %c0_16 = arith.constant 0 : index
    %27 = vector.load %arg7[%c0_15, %c0_16] : memref<32x128xbf16, #tpu.memory_space<vmem>>, vector<32x128xbf16>
    tpu.vector_store %arg7[%c0_15, %c0_16], %26 {strides = array<i32>} : memref<32x128xbf16, #tpu.memory_space<vmem>>, vector<32x128xbf16>,
    %28 = vector.extract_strided_slice %24 {offsets = [32, 0], sizes = [32, 128], strides = [1, 1]} : vector<64x128xf32> to vector<32x128xf32>
    %cst_17 = arith.constant 5.000000e+00 : f32
    %29 = vector.broadcast %cst_17 : f32 to vector<32x128xf32>
    %30 = arith.mulf %28, %29 : vector<32x128xf32>
    %31 = arith.truncf %30 : vector<32x128xf32> to vector<32x128xbf16>
    %c0_18 = arith.constant 0 : index
    %c0_19 = arith.constant 0 : index
    %32 = vector.load %arg8[%c0_18, %c0_19] : memref<32x128xbf16, #tpu.memory_space<vmem>>, vector<32x128xbf16>
    tpu.vector_store %arg8[%c0_18, %c0_19], %31 {strides = array<i32>} : memref<32x128xbf16, #tpu.memory_space<vmem>>, vector<32x128xbf16>,
    return
  }
  func.func @transform_0(%arg0: i32) -> (i32, i32) {
    %c0_i32 = arith.constant 0 : i32
    %c0_i32_0 = arith.constant 0 : i32
    return %arg0, %c0_i32 : i32, i32
  }
  func.func @transform_1(%arg0: i32) -> (i32, i32) {
    %c0_i32 = arith.constant 0 : i32
    %c0_i32_0 = arith.constant 0 : i32
    return %arg0, %c0_i32 : i32, i32
  }
  func.func @transform_2(%arg0: i32) -> (i32, i32) {
    %c0_i32 = arith.constant 0 : i32
    %c0_i32_0 = arith.constant 0 : i32
    %c0_i32_1 = arith.constant 0 : i32
    return %c0_i32, %c0_i32_0 : i32, i32
  }
  func.func @transform_3(%arg0: i32) -> (i32, i32) {
    %c0_i32 = arith.constant 0 : i32
    %c0_i32_0 = arith.constant 0 : i32
    %c0_i32_1 = arith.constant 0 : i32
    return %c0_i32, %c0_i32_0 : i32, i32
  }
  func.func @transform_4(%arg0: i32) -> (i32, i32) {
    %c0_i32 = arith.constant 0 : i32
    %c0_i32_0 = arith.constant 0 : i32
    %c0_i32_1 = arith.constant 0 : i32
    return %c0_i32, %c0_i32_0 : i32, i32
  }
  func.func @transform_5(%arg0: i32) -> (i32, i32) {
    %c0_i32 = arith.constant 0 : i32
    %c0_i32_0 = arith.constant 0 : i32
    %c0_i32_1 = arith.constant 0 : i32
    return %c0_i32, %c0_i32_0 : i32, i32
  }
  func.func @transform_6(%arg0: i32) -> (i32, i32) {
    %c0_i32 = arith.constant 0 : i32
    %c0_i32_0 = arith.constant 0 : i32
    return %arg0, %c0_i32 : i32, i32
  }
  func.func @transform_7(%arg0: i32) -> (i32, i32) {
    %c0_i32 = arith.constant 0 : i32
    %c0_i32_0 = arith.constant 0 : i32
    return %arg0, %c0_i32 : i32, i32
  }
}

module attributes {stable_mosaic.version = 11 : i64} {
  func.func @_loss_kernel(%arg0: i32, %arg1: memref<32x128xbf16, #tpu.memory_space<vmem>>, %arg2: memref<32x128xbf16, #tpu.memory_space<vmem>>, %arg3: memref<32x1xf32, #tpu.memory_space<vmem>>) attributes {dimension_semantics = [#tpu.dimension_semantics<parallel>], iteration_bounds = array<i64: 1>, scalar_prefetch = 0 : i64, scratch_operands = 0 : i64, tpu.core_type = #tpu.core_type<tc>, window_params = [{transform_indices = @transform_0, window_bounds = array<i64: 32, 128>}, {pipeline_mode = #tpu.pipeline_mode<synchronous>, transform_indices = @transform_1, window_bounds = array<i64: 32, 128>}, {transform_indices = @transform_2, window_bounds = array<i64: 32, 1>}]} {
    %c0 = arith.constant 0 : index
    %c0_0 = arith.constant 0 : index
    %0 = vector.load %arg1[%c0, %c0_0] : memref<32x128xbf16, #tpu.memory_space<vmem>>, vector<32x128xbf16>
    %cst = arith.constant 0.000000e+00 : f32
    %1 = vector.broadcast %cst : f32 to vector<32x1xf32>
    %c0_i32 = arith.constant 0 : i32
    %c32_i32 = arith.constant 32 : i32
    %2 = arith.muli %c0_i32, %c32_i32 : i32
    %3 = tpu.assume_multiple %2, 32 : i32
    %4 = arith.index_cast %3 : i32 to index
    %c0_1 = arith.constant 0 : index
    %5 = vector.load %arg2[%4, %c0_1] : memref<32x128xbf16, #tpu.memory_space<vmem>>, vector<32x128xbf16>
    %cst_2 = arith.constant dense<0.000000e+00> : vector<32x32xf32>
    %6 = tpu.matmul %0, %5, %cst_2 {dimension_numbers = #tpu.dot_dimension_numbers<[1], [1], [0], [0], [0, 0, 1, 0], [], []>} : vector<32x128xbf16>, vector<32x128xbf16>, vector<32x32xf32> -> vector<32x32xf32>
    %cst_3 = arith.constant 5.000000e+00 : f32
    %7 = vector.broadcast %cst_3 : f32 to vector<32x32xf32>
    %8 = arith.subf %6, %7 : vector<32x32xf32>
    %9 = math.exp %8 : vector<32x32xf32>
    %cst_4 = arith.constant dense<0.000000e+00> : vector<32xf32>
    %10 = vector.multi_reduction <add>, %9, %cst_4 [1] : vector<32x32xf32> to vector<32xf32>
    %11 = vector.shape_cast %10 : vector<32xf32> to vector<32x1xf32>
    %12 = arith.addf %1, %11 : vector<32x1xf32>
    %c1_i32 = arith.constant 1 : i32
    %13 = math.log %12 : vector<32x1xf32>
    %cst_5 = arith.constant 5.000000e+00 : f32
    %14 = vector.broadcast %cst_5 : f32 to vector<32x1xf32>
    %15 = arith.addf %14, %13 : vector<32x1xf32>
    %c32_i32_6 = arith.constant 32 : i32
    %16 = arith.muli %arg0, %c32_i32_6 : i32
    %17 = tpu.assume_multiple %16, 32 : i32
    %18 = arith.index_cast %17 : i32 to index
    %c0_7 = arith.constant 0 : index
    %19 = vector.load %arg2[%18, %c0_7] : memref<32x128xbf16, #tpu.memory_space<vmem>>, vector<32x128xbf16>
    %20 = arith.extf %0 : vector<32x128xbf16> to vector<32x128xf32>
    %21 = arith.extf %19 : vector<32x128xbf16> to vector<32x128xf32>
    %22 = arith.mulf %20, %21 : vector<32x128xf32>
    %cst_8 = arith.constant dense<0.000000e+00> : vector<32xf32>
    %23 = vector.multi_reduction <add>, %22, %cst_8 [1] : vector<32x128xf32> to vector<32xf32>
    %24 = vector.shape_cast %23 : vector<32xf32> to vector<32x1xf32>
    %25 = arith.subf %15, %24 : vector<32x1xf32>
    %c0_9 = arith.constant 0 : index
    %c0_10 = arith.constant 0 : index
    %26 = vector.load %arg3[%c0_9, %c0_10] : memref<32x1xf32, #tpu.memory_space<vmem>>, vector<32x1xf32>
    tpu.vector_store %arg3[%c0_9, %c0_10], %25 {strides = array<i32>} : memref<32x1xf32, #tpu.memory_space<vmem>>, vector<32x1xf32>,
    return
  }
  func.func @transform_0(%arg0: i32) -> (i32, i32) {
    %c0_i32 = arith.constant 0 : i32
    %c0_i32_0 = arith.constant 0 : i32
    return %arg0, %c0_i32 : i32, i32
  }
  func.func @transform_1(%arg0: i32) -> (i32, i32) {
    %c0_i32 = arith.constant 0 : i32
    %c0_i32_0 = arith.constant 0 : i32
    %c0_i32_1 = arith.constant 0 : i32
    return %c0_i32, %c0_i32_0 : i32, i32
  }
  func.func @transform_2(%arg0: i32) -> (i32, i32) {
    %c0_i32 = arith.constant 0 : i32
    %c0_i32_0 = arith.constant 0 : i32
    return %arg0, %c0_i32 : i32, i32
  }
}

</mosaic_0001>

<bundles_post_ra>
// kernel: simclr_loss.3
= control target key start
LH: loop header
LB: loop body
LE: loop exit
PB: predicated region body
PF: predicated region fallthrough
CT: control target
= control target key end

     0   :  { %vm105_vm0 = vcmask 261120   ;;  %vm167_vm1 = vcmask 7168   ;;  %s278_s1 = inlined_call_operand.vmem [shape: bf16[32,128], index: 1, kind: input, shape index: {}]   ;;  %s279_s0 = inlined_call_operand.vmem [shape: bf16[32,128], index: 0, kind: input, shape index: {}]   ;;  %s280_s2 = inlined_call_operand.vmem [shape: f32[32,1], index: 2, kind: output, shape index: {}]  }
   0x1   :  { %v207_v0 = vld [vmem:[%s278_s1] sm:$0xff]   ;;  %v208_v1 = vld [vmem:[%s278_s1 + $0x8] sm:$0xff]  }
   0x2   :  { %199 = vmatprep.subr.bf16.mxu0 %v207_v0  ;;  %v12_v2 = vld [vmem:[%s279_s0] sm:$0xff]   ;;  %v14_v3 = vld [vmem:[%s279_s0 + $0x8] sm:$0xff]  }
   0x3   :  { %200 = vmatpush3.bf16.xpose.msra.mxu0 %v207_v0  ;;  %203 = vmatprep.mubr.bf16.mxu0 %v12_v2  ;;  %v187_v17 = vld [vmem:[%s278_s1] sm:$0xff]   ;;  %v144_v21 = vunpack.c.h.bf16 %v12_v2  ;;  %v143_v25 = vunpack.c.l.bf16 %v12_v2  ;;  %v194_v27 = vld [vmem:[%s278_s1 + $0x8] sm:$0xff]   ;;  %v146_v32 = vunpack.c.h.bf16 %v14_v3  ;;  %v145_v35 = vunpack.c.l.bf16 %v14_v3 }
   0x4   :  { %201 = vmatprep.subr.bf16.mxu0 %v208_v1  ;;  %v189_v23 = vunpack.c.h.bf16 %v187_v17  ;;  %v188_v26 = vunpack.c.l.bf16 %v187_v17  ;;  %v193_v31 = vunpack.c.h.bf16 %v194_v27  ;;  %v192_v34 = vunpack.c.l.bf16 %v194_v27 }
   0x6   :  { %v152_v30 = vmul.f32 %v189_v23, %v144_v21  ;;  %v151_v33 = vmul.f32 %v188_v26, %v143_v25  ;;  %v154_v36 = vmul.f32 %v193_v31, %v146_v32  ;;  %v153_v37 = vmul.f32 %v192_v34, %v145_v35 }
   0xb   :  { %202 = vmatpush3.bf16.xpose.msra.mxu0 %v208_v1 }
  0x12   :  { %204 = vmatmul.mubr.bf16.vlgmr.msra.gmra.mrb[0].mxu0 %v14_v3 }
  0xe5   :  { %v205_v4 = vpop.f32.mrb[0].mxu0 }
  0xe6   :  { %v184_v5 = vadd.f32 -5.0, %v205_v4  ;;  %v78_v6 = vpop.f32.mrb[1].mxu0 }
  0xe7   :  { %v182_v7 = vadd.f32 -5.0, %v78_v6  ;;  %v206_v8 = vpop.f32.mrb[2].mxu0 }
  0xe8   :  { %v101_v9 = vmul.f32 1.442695, %v184_v5  ;;  %v185_v10 = vadd.f32 -5.0, %v206_v8  ;;  %v81_v11 = vpop.f32.mrb[3].mxu0 }
  0xe9   :  { %v97_v12 = vmul.f32 1.442695, %v182_v7  ;;  %v183_v13 = vadd.f32 -5.0, %v81_v11 }
  0xea   :  { %213 = vpow2.f32 %v101_v9  ;;  %v103_v14 = vmul.f32 1.442695, %v185_v10 }
  0xeb   :  { %215 = vpow2.f32 %v97_v12  ;;  %v99_v15 = vmul.f32 1.442695, %v183_v13 }
  0xec   :  { %217 = vpow2.f32 %v103_v14 }
  0xed   :  { %219 = vpow2.f32 %v99_v15 }
  0xf4   :  { %v214_v16 = vpop.eup %213 }
  0xf5   :  { %v216_v18 = vpop.eup %215  ;;  %v112_v19 = vsel %vm105_vm0, %v214_v16, 0.0 }
  0xf6   :  { %v218_v20 = vpop.eup %217  ;;  %113 = vadd.xlane.f32.xlu1 %v112_v19  ;;  %v106_v22 = vsel %vm105_vm0, %v216_v18, 0.0 }
  0xf7   :  { %v220_v24 = vpop.eup %219  ;;  %107 = vadd.xlane.f32.xlu0 %v106_v22  ;;  %v115_v28 = vsel %vm105_vm0, %v218_v20, 0.0 }
  0xf8   :  { %v109_v29 = vsel %vm105_vm0, %v220_v24, 0.0 }
  0xfa   :  { %116 = vadd.xlane.f32.xlu1 %v115_v28 }
  0xfb   :  { %110 = vadd.xlane.f32.xlu0 %v109_v29 }
  0xfe   :  { %157 = vadd.xlane.f32.xlu1 %v152_v30 }
  0xff   :  { %155 = vadd.xlane.f32.xlu0 %v151_v33 }
 0x102   :  { %161 = vadd.xlane.f32.xlu1 %v154_v36 }
 0x103   :  { %159 = vadd.xlane.f32.xlu0 %v153_v37 }
 0x183   :  { %v114_v38 = vpop.xlane.xlu1 %113 }
 0x184   :  { %221 = vlog2.f32 %v114_v38  ;;  %v108_v39 = vpop.xlane.xlu0 %107 }
 0x185   :  { %223 = vlog2.f32 %v108_v39 }
 0x187   :  { %v117_v40 = vpop.xlane.xlu1 %116 }
 0x188   :  { %225 = vlog2.f32 %v117_v40  ;;  %v111_v41 = vpop.xlane.xlu0 %110 }
 0x189   :  { %227 = vlog2.f32 %v111_v41 }
 0x18b   :  { %v158_v44 = vpop.xlane.xlu1 %157 }
 0x18c   :  { %v156_v42 = vpop.xlane.xlu0 %155 }
 0x18e   :  { %v222_v43 = vpop.eup %221 }
 0x18f   :  { %v224_v45 = vpop.eup %223  ;;  %v127_v46 = vmul.f32 0.6931472, %v222_v43  ;;  %v162_v57 = vpop.xlane.xlu1 %161 }
 0x190   :  { %v123_v47 = vmul.f32 0.6931472, %v224_v45  ;;  %v160_v48 = vpop.xlane.xlu0 %159 }
 0x191   :  { %v132_v49 = vadd.f32 5.0, %v127_v46 }
 0x192   :  { %v226_v50 = vpop.eup %225  ;;  %v130_v51 = vadd.f32 5.0, %v123_v47 }
 0x193   :  { %v228_v52 = vpop.eup %227  ;;  %v165_v53 = vsub.f32 %v132_v49, %v160_v48  ;;  %v129_v54 = vmul.f32 0.6931472, %v226_v50 }
 0x194   :  { %v163_v55 = vsub.f32 %v130_v51, %v156_v42  ;;  %v125_v56 = vmul.f32 0.6931472, %v228_v52 }
 0x195   :  { %170 = vst.msk [vmem:[%s280_s2 + $0x10] sm:$0xff] %vm167_vm1, %v165_v53  ;;  %v133_v58 = vadd.f32 5.0, %v129_v54 }
 0x196   :  { %168 = vst.msk [vmem:[%s280_s2] sm:$0xff] %vm167_vm1, %v163_v55  ;;  %v131_v59 = vadd.f32 5.0, %v125_v56 }
 0x197   :  { %v166_v60 = vsub.f32 %v133_v58, %v162_v57 }
 0x198   :  { %v164_v61 = vsub.f32 %v131_v59, %v158_v44 }
 0x199   :  { %171 = vst.msk [vmem:[%s280_s2 + $0x18] sm:$0xff] %vm167_vm1, %v166_v60 }
 0x19a   :  { %169 = vst.msk [vmem:[%s280_s2 + $0x8] sm:$0xff] %vm167_vm1, %v164_v61 }

// kernel: simclr_loss.2
= control target key start
LH: loop header
LB: loop body
LE: loop exit
PB: predicated region body
PF: predicated region fallthrough
CT: control target
= control target key end

     0   :  { %v1219_v1 = vmov 0   ;;  %s1572_s2 = inlined_call_operand.vmem [shape: bf16[128,512], index: 2, kind: input, shape index: {}]   ;;  %s1573_s0 = inlined_call_operand.vmem [shape: f32[32,128], index: 0, kind: input, shape index: {}]   ;;  %s1574_s4 = inlined_call_operand.vmem [shape: bf16[512,128], index: 4, kind: input, shape index: {}]   ;;  %s1575_s1 = inlined_call_operand.vmem [shape: f32[32,128], index: 1, kind: input, shape index: {}]   ;;  %s1576_s3 = inlined_call_operand.vmem [shape: f32[1,512], index: 3, kind: input, shape index: {}]   ;;  %s1577_s5 = inlined_call_operand.vmem [shape: f32[1,128], index: 5, kind: input, shape index: {}]   ;;  %s1578_s6 = inlined_call_operand.vmem [shape: bf16[32,128], index: 6, kind: output, shape index: {0}]   ;;  %s1579_s7 = inlined_call_operand.vmem [shape: bf16[32,128], index: 7, kind: output, shape index: {1}]  }
   0x1   :  { %v1123_v0 = vld [vmem:[%s1572_s2 + $0x4] ss:$16 sps:$4 sm:$0xff]   ;;  %284 = vmatprep.mubr.bf16.mxu0 %v1219_v1  ;;  %357 = vmatprep.mubr.bf16.mxu1 %v1219_v1  ;;  %v1125_v2 = vld [vmem:[%s1572_s2 + $0xc] ss:$16 sps:$4 sm:$0xff]   ;;  %v1127_v3 = vld [vmem:[%s1572_s2] ss:$16 sps:$4 sm:$0xff]  }
   0x2   :  { %252 = vmatprep.subr.bf16.mxu0 %v1123_v0  ;;  %v1128_v4 = vld [vmem:[%s1572_s2 + $0x8] ss:$16 sps:$4 sm:$0xff]   ;;  %325 = vmatprep.subr.bf16.mxu1 %v1125_v2  ;;  %v1129_v5 = vld [vmem:[%s1572_s2 + $0x24] ss:$16 sps:$4 sm:$0xff]   ;;  %v1131_v6 = vld [vmem:[%s1572_s2 + $0x2c] ss:$16 sps:$4 sm:$0xff]  }
   0x3   :  { %253 = vmatpush1.bf16.msra.mxu0 %v1127_v3  ;;  %326 = vmatpush1.bf16.msra.mxu1 %v1128_v4  ;;  %v1133_v7 = vld [vmem:[%s1572_s2 + $0x20] ss:$16 sps:$4 sm:$0xff]   ;;  %v1134_v8 = vld [vmem:[%s1572_s2 + $0x28] ss:$16 sps:$4 sm:$0xff]   ;;  %v1135_v9 = vld [vmem:[%s1572_s2 + $0x44] ss:$16 sps:$4 sm:$0xff]  }
   0x4   :  { %254 = vmatprep.subr.bf16.mxu0 %v1129_v5  ;;  %327 = vmatprep.subr.bf16.mxu1 %v1131_v6  ;;  %v1137_v10 = vld [vmem:[%s1572_s2 + $0x4c] ss:$16 sps:$4 sm:$0xff]   ;;  %v1139_v11 = vld [vmem:[%s1572_s2 + $0x40] ss:$16 sps:$4 sm:$0xff]   ;;  %v1140_v12 = vld [vmem:[%s1572_s2 + $0x48] ss:$16 sps:$4 sm:$0xff]  }
   0x5   :  { %v1141_v13 = vld [vmem:[%s1572_s2 + $0x64] ss:$16 sps:$4 sm:$0xff]   ;;  %v1143_v14 = vld [vmem:[%s1572_s2 + $0x6c] ss:$16 sps:$4 sm:$0xff]   ;;  %v1145_v15 = vld [vmem:[%s1572_s2 + $0x60] ss:$16 sps:$4 sm:$0xff]  }
   0x6   :  { %v1146_v16 = vld [vmem:[%s1572_s2 + $0x68] ss:$16 sps:$4 sm:$0xff]   ;;  %v1147_v17 = vld [vmem:[%s1572_s2 + $0x84] ss:$16 sps:$4 sm:$0xff]   ;;  %v1149_v18 = vld [vmem:[%s1572_s2 + $0x8c] ss:$16 sps:$4 sm:$0xff]  }
   0x7   :  { %255 = vmatpush1.bf16.msra.mxu0 %v1133_v7  ;;  %328 = vmatpush1.bf16.msra.mxu1 %v1134_v8  ;;  %v1151_v19 = vld [vmem:[%s1572_s2 + $0x80] ss:$16 sps:$4 sm:$0xff]   ;;  %v1152_v20 = vld [vmem:[%s1572_s2 + $0x88] ss:$16 sps:$4 sm:$0xff]   ;;  %v1153_v21 = vld [vmem:[%s1572_s2 + $0xa4] ss:$16 sps:$4 sm:$0xff]  }
   0x8   :  { %256 = vmatprep.subr.bf16.mxu0 %v1135_v9  ;;  %329 = vmatprep.subr.bf16.mxu1 %v1137_v10  ;;  %v1155_v22 = vld [vmem:[%s1572_s2 + $0xac] ss:$16 sps:$4 sm:$0xff]   ;;  %v1157_v23 = vld [vmem:[%s1572_s2 + $0xa0] ss:$16 sps:$4 sm:$0xff]   ;;  %v1158_v24 = vld [vmem:[%s1572_s2 + $0xa8] ss:$16 sps:$4 sm:$0xff]  }
   0x9   :  { %v1159_v25 = vld [vmem:[%s1572_s2 + $0xc4] ss:$16 sps:$4 sm:$0xff]   ;;  %v1161_v26 = vld [vmem:[%s1572_s2 + $0xcc] ss:$16 sps:$4 sm:$0xff]   ;;  %v1163_v27 = vld [vmem:[%s1572_s2 + $0xc0] ss:$16 sps:$4 sm:$0xff]  }
   0xa   :  { %v1164_v28 = vld [vmem:[%s1572_s2 + $0xc8] ss:$16 sps:$4 sm:$0xff]   ;;  %v1165_v29 = vld [vmem:[%s1572_s2 + $0xe4] ss:$16 sps:$4 sm:$0xff]   ;;  %v1167_v30 = vld [vmem:[%s1572_s2 + $0xec] ss:$16 sps:$4 sm:$0xff]  }
   0xb   :  { %257 = vmatpush1.bf16.msra.mxu0 %v1139_v11  ;;  %330 = vmatpush1.bf16.msra.mxu1 %v1140_v12  ;;  %v1169_v31 = vld [vmem:[%s1572_s2 + $0xe0] ss:$16 sps:$4 sm:$0xff]   ;;  %v1170_v32 = vld [vmem:[%s1572_s2 + $0xe8] ss:$16 sps:$4 sm:$0xff]  }
   0xc   :  { %258 = vmatprep.subr.bf16.mxu0 %v1141_v13  ;;  %331 = vmatprep.subr.bf16.mxu1 %v1143_v14  ;;  %v26_v33 = vld [vmem:[%s1573_s0] sm:$0xff]  ;;  %v27_v34 = vld [vmem:[%s1573_s0 + $0x8] sm:$0xff]  ;;  %v28_v41 = vld [vmem:[%s1573_s0 + $0x10] sm:$0xff]  ;;  %v72_v13 = vlaneseq }
   0xd   :  { %v1171_v35 = vld [vmem:[%s1574_s4 + $0x40] sm:$0xff]   ;;  %v34_v37 = vpack.c.bf16 %v27_v34, %v26_v33  ;;  %v1175_v40 = vld [vmem:[%s1574_s4 + $0x48] sm:$0xff]   ;;  %v29_v42 = vld [vmem:[%s1573_s0 + $0x18] sm:$0xff] }
   0xe   :  { %v1173_v36 = vld [vmem:[%s1574_s4 + $0xc0] sm:$0xff]   ;;  %v1177_v43 = vld [vmem:[%s1574_s4 + $0xc8] sm:$0xff]   ;;  %v1179_v46 = vld [vmem:[%s1574_s4 + $0x50] sm:$0xff]   ;;  %v35_v48 = vpack.c.bf16 %v29_v42, %v28_v41  ;;  %v73_v14 = vshrl.u32 %v72_v13, 7 }
   0xf   :  { %259 = vmatpush1.bf16.msra.mxu0 %v1145_v15  ;;  %332 = vmatpush1.bf16.msra.mxu1 %v1146_v16  ;;  %v1172_v38 = vld [vmem:[%s1574_s4] sm:$0xff]   ;;  %v1176_v44 = vld [vmem:[%s1574_s4 + $0x8] sm:$0xff]   ;;  %v1181_v47 = vld [vmem:[%s1574_s4 + $0xd0] sm:$0xff]  }
  0x10   :  { %260 = vmatprep.subr.bf16.mxu0 %v1147_v17  ;;  %333 = vmatprep.subr.bf16.mxu1 %v1149_v18  ;;  %v1174_v39 = vld [vmem:[%s1574_s4 + $0x80] sm:$0xff]   ;;  %v1178_v45 = vld [vmem:[%s1574_s4 + $0x88] sm:$0xff]   ;;  %v1180_v49 = vld [vmem:[%s1574_s4 + $0x10] sm:$0xff]   ;;  %v74_v15 = vsub.s32 0, %v73_v14  ;;  %v82_v16 = vsub.s32 2, %v73_v14  ;;  %v78_v18 = vsub.s32 1, %v73_v14 }
  0x11   :  { %v1182_v50 = vld [vmem:[%s1574_s4 + $0x90] sm:$0xff]   ;;  %v1183_v51 = vld [vmem:[%s1574_s4 + $0x58] sm:$0xff]   ;;  %v30_v52 = vld [vmem:[%s1575_s1] sm:$0xff] }
  0x12   :  { %v31_v53 = vld [vmem:[%s1575_s1 + $0x8] sm:$0xff]  ;;  %v1185_v54 = vld [vmem:[%s1574_s4 + $0xd8] sm:$0xff]   ;;  %v1187_v57 = vld [vmem:[%s1574_s4 + $0x60] sm:$0xff]  }
  0x13   :  { %261 = vmatpush1.bf16.msra.mxu0 %v1151_v19  ;;  %334 = vmatpush1.bf16.msra.mxu1 %v1152_v20  ;;  %v1184_v55 = vld [vmem:[%s1574_s4 + $0x18] sm:$0xff]   ;;  %v1189_v58 = vld [vmem:[%s1574_s4 + $0xe0] sm:$0xff]   ;;  %v36_v59 = vpack.c.bf16 %v31_v53, %v30_v52  ;;  %v1191_v62 = vld [vmem:[%s1574_s4 + $0x68] sm:$0xff]   ;;  %v86_v19 = vsub.s32 3, %v73_v14 }
  0x14   :  { %262 = vmatprep.subr.bf16.mxu0 %v1153_v21  ;;  %335 = vmatprep.subr.bf16.mxu1 %v1155_v22  ;;  %v1186_v56 = vld [vmem:[%s1574_s4 + $0x98] sm:$0xff]   ;;  %v1188_v60 = vld [vmem:[%s1574_s4 + $0x20] sm:$0xff]   ;;  %v1193_v63 = vld [vmem:[%s1574_s4 + $0xe8] sm:$0xff]  }
  0x15   :  { %v1190_v61 = vld [vmem:[%s1574_s4 + $0xa0] sm:$0xff]   ;;  %v32_v0 = vld [vmem:[%s1575_s1 + $0x10] sm:$0xff]  ;;  %v33_v2 = vld [vmem:[%s1575_s1 + $0x18] sm:$0xff] }
  0x16   :  { %v1192_v3 = vld [vmem:[%s1574_s4 + $0x28] sm:$0xff]   ;;  %v37_v4 = vpack.c.bf16 %v33_v2, %v32_v0  ;;  %v1197_v6 = vld [vmem:[%s1574_s4 + $0xf0] sm:$0xff]   ;;  %v1199_v9 = vld [vmem:[%s1574_s4 + $0x78] sm:$0xff]  }
  0x17   :  { %263 = vmatpush1.bf16.msra.mxu0 %v1157_v23  ;;  %336 = vmatpush1.bf16.msra.mxu1 %v1158_v24  ;;  %v1194_v5 = vld [vmem:[%s1574_s4 + $0xa8] sm:$0xff]   ;;  %v1196_v7 = vld [vmem:[%s1574_s4 + $0x30] sm:$0xff]   ;;  %v1201_v10 = vld [vmem:[%s1574_s4 + $0xf8] sm:$0xff]  }
  0x18   :  { %264 = vmatprep.subr.bf16.mxu0 %v1159_v25  ;;  %337 = vmatprep.subr.bf16.mxu1 %v1161_v26  ;;  %v1198_v8 = vld [vmem:[%s1574_s4 + $0xb0] sm:$0xff]   ;;  %v1200_v11 = vld [vmem:[%s1574_s4 + $0x38] sm:$0xff]   ;;  %v70_v17 = vld [vmem:[%s1576_s3] sm:$0xf] }
  0x19   :  { %v1202_v12 = vld [vmem:[%s1574_s4 + $0xb8] sm:$0xff]   ;;  %v1487_v20 = vrot.slane %v70_v17, %v74_v15  ;;  %v1489_v21 = vrot.slane %v70_v17, %v82_v16  ;;  %v1491_v22 = vrot.slane %v70_v17, %v78_v18  ;;  %v1493_v23 = vrot.slane %v70_v17, %v86_v19 }
  0x1b   :  { %265 = vmatpush1.bf16.msra.mxu0 %v1163_v27  ;;  %338 = vmatpush1.bf16.msra.mxu1 %v1164_v28 }
  0x1c   :  { %266 = vmatprep.subr.bf16.mxu0 %v1165_v29  ;;  %339 = vmatprep.subr.bf16.mxu1 %v1167_v30 }
  0x1f   :  { %267 = vmatpush1.bf16.msra.mxu0 %v1169_v31  ;;  %340 = vmatpush1.bf16.msra.mxu1 %v1170_v32 }
  0x20   :  { %1042 = vmatprep.subr.bf16.mxu0 %v1171_v35  ;;  %1082 = vmatprep.subr.bf16.mxu1 %v1173_v36 }
  0x22   :  { %285 = vmatmul.mubr.bf16.vlgmr.msra.gmra.mrb[0].mxu0 %v34_v37  ;;  %358 = vmatmul.mubr.bf16.vlgmr.msra.gmra.mrb[0].mxu1 %v34_v37 }
  0x23   :  { %294 = vmatprep.mubr.bf16.mxu0 %v1219_v1  ;;  %367 = vmatprep.mubr.bf16.mxu1 %v1219_v1 }
  0x24   :  { %1043 = vmatpush3.bf16.msra.mxu0 %v1172_v38  ;;  %1083 = vmatpush3.bf16.msra.mxu1 %v1174_v39 }
  0x25   :  { %1044 = vmatprep.subr.bf16.mxu0 %v1175_v40  ;;  %1084 = vmatprep.subr.bf16.mxu1 %v1177_v43 }
  0x28   :  { %1045 = vmatpush3.bf16.msra.mxu0 %v1176_v44  ;;  %1085 = vmatpush3.bf16.msra.mxu1 %v1178_v45 }
  0x29   :  { %1046 = vmatprep.subr.bf16.mxu0 %v1179_v46  ;;  %1086 = vmatprep.subr.bf16.mxu1 %v1181_v47 }
  0x2a   :  { %295 = vmatmul.mubr.bf16.gmra.mrb[4].mxu0 %v35_v48  ;;  %368 = vmatmul.mubr.bf16.gmra.mrb[4].mxu1 %v35_v48 }
  0x2b   :  { %304 = vmatprep.mubr.bf16.mxu0 %v1219_v1  ;;  %377 = vmatprep.mubr.bf16.mxu1 %v1219_v1 }
  0x2c   :  { %1047 = vmatpush3.bf16.msra.mxu0 %v1180_v49  ;;  %1087 = vmatpush3.bf16.msra.mxu1 %v1182_v50 }
  0x2d   :  { %1048 = vmatprep.subr.bf16.mxu0 %v1183_v51  ;;  %1088 = vmatprep.subr.bf16.mxu1 %v1185_v54 }
  0x30   :  { %1049 = vmatpush3.bf16.msra.mxu0 %v1184_v55  ;;  %1089 = vmatpush3.bf16.msra.mxu1 %v1186_v56 }
  0x31   :  { %1050 = vmatprep.subr.bf16.mxu0 %v1187_v57  ;;  %1090 = vmatprep.subr.bf16.mxu1 %v1189_v58 }
  0x32   :  { %305 = vmatmul.mubr.bf16.gmra.mrb[8].mxu0 %v36_v59  ;;  %378 = vmatmul.mubr.bf16.gmra.mrb[8].mxu1 %v36_v59 }
  0x33   :  { %314 = vmatprep.mubr.bf16.mxu0 %v1219_v1  ;;  %387 = vmatprep.mubr.bf16.mxu1 %v1219_v1  ;;  %v1195_v1 = vld [vmem:[%s1574_s4 + $0x70] sm:$0xff]  }
  0x34   :  { %1051 = vmatpush3.bf16.msra.mxu0 %v1188_v60  ;;  %1091 = vmatpush3.bf16.msra.mxu1 %v1190_v61 }
  0x35   :  { %1052 = vmatprep.subr.bf16.mxu0 %v1191_v62  ;;  %1092 = vmatprep.subr.bf16.mxu1 %v1193_v63 }
  0x38   :  { %1053 = vmatpush3.bf16.msra.mxu0 %v1192_v3  ;;  %1093 = vmatpush3.bf16.msra.mxu1 %v1194_v5 }
  0x39   :  { %1054 = vmatprep.subr.bf16.mxu0 %v1195_v1  ;;  %1094 = vmatprep.subr.bf16.mxu1 %v1197_v6 }
  0x3a   :  { %315 = vmatmul.mubr.bf16.gmra.mrb[12].mxu0 %v37_v4  ;;  %388 = vmatmul.mubr.bf16.gmra.mrb[12].mxu1 %v37_v4 }
  0x3c   :  { %1055 = vmatpush3.bf16.msra.mxu0 %v1196_v7  ;;  %1095 = vmatpush3.bf16.msra.mxu1 %v1198_v8 }
  0x3d   :  { %1056 = vmatprep.subr.bf16.mxu0 %v1199_v9  ;;  %1096 = vmatprep.subr.bf16.mxu1 %v1201_v10 }
  0x40   :  { %1057 = vmatpush3.bf16.msra.mxu0 %v1200_v11  ;;  %1097 = vmatpush3.bf16.msra.mxu1 %v1202_v12 }
  0xf5   :  { %v286_v24 = vpop.f32.mrb[0].mxu0  ;;  %v359_v25 = vpop.f32.mrb[0].mxu1 }
  0xf6   :  { %v287_v26 = vadd.f32 %v286_v24, %v1487_v20  ;;  %v360_v27 = vadd.f32 %v359_v25, %v1489_v21  ;;  %v288_v28 = vpop.f32.mrb[1].mxu0  ;;  %v361_v29 = vpop.f32.mrb[1].mxu1 }
  0xf7   :  { %v289_v30 = vadd.f32 %v288_v28, %v1491_v22  ;;  %v362_v31 = vadd.f32 %v361_v29, %v1493_v23  ;;  %v290_v32 = vpop.f32.mrb[2].mxu0  ;;  %v363_v33 = vpop.f32.mrb[2].mxu1 }
  0xf8   :  { %v400_v34 = vmax.f32 %v360_v27, 0.0  ;;  %v291_v35 = vadd.f32 %v290_v32, %v1487_v20  ;;  %v364_v36 = vadd.f32 %v363_v33, %v1489_v21  ;;  %v292_v37 = vpop.f32.mrb[3].mxu0  ;;  %v365_v38 = vpop.f32.mrb[3].mxu1  ;;  %v398_v42 = vmax.f32 %v287_v26, 0.0 }
  0xf9   :  { %v401_v39 = vmax.f32 %v362_v31, 0.0  ;;  %v293_v40 = vadd.f32 %v292_v37, %v1491_v22  ;;  %v366_v41 = vadd.f32 %v365_v38, %v1493_v23  ;;  %v399_v45 = vmax.f32 %v289_v30, 0.0 }
  0xfa   :  { %v402_v43 = vmax.f32 %v291_v35, 0.0  ;;  %v404_v44 = vmax.f32 %v364_v36, 0.0 }
  0xfb   :  { %v403_v46 = vmax.f32 %v293_v40, 0.0  ;;  %v405_v47 = vmax.f32 %v366_v41, 0.0 }
  0xfc   :  { %v430_v48 = vpack.c.bf16 %v402_v43, %v398_v42  ;;  %v432_v49 = vpack.c.bf16 %v404_v44, %v400_v34 }
  0xfd   :  { %v431_v50 = vpack.c.bf16 %v403_v46, %v399_v45  ;;  %v433_v51 = vpack.c.bf16 %v405_v47, %v401_v39  ;;  %v296_v52 = vpop.f32.mrb[4].mxu0  ;;  %v369_v53 = vpop.f32.mrb[4].mxu1 }
  0xfe   :  { %v297_v54 = vadd.f32 %v296_v52, %v1487_v20  ;;  %v370_v55 = vadd.f32 %v369_v53, %v1489_v21  ;;  %v298_v56 = vpop.f32.mrb[5].mxu0  ;;  %v371_v57 = vpop.f32.mrb[5].mxu1 }
  0xff   :  { %v299_v58 = vadd.f32 %v298_v56, %v1491_v22  ;;  %v372_v59 = vadd.f32 %v371_v57, %v1493_v23  ;;  %v300_v60 = vpop.f32.mrb[6].mxu0  ;;  %v373_v61 = vpop.f32.mrb[6].mxu1  ;;  %741 = vmatprep.mubr.bf16.mxu0 %v431_v50  ;;  %806 = vmatprep.mubr.bf16.mxu1 %v433_v51 }
 0x100   :  { %v408_v62 = vmax.f32 %v370_v55, 0.0  ;;  %v301_v63 = vadd.f32 %v300_v60, %v1487_v20  ;;  %v374_v0 = vadd.f32 %v373_v61, %v1489_v21  ;;  %v302_v2 = vpop.f32.mrb[7].mxu0  ;;  %v375_v3 = vpop.f32.mrb[7].mxu1  ;;  %742 = vmatmul.mubr.bf16.vlgmr.msra.gmra.mrb[16].mxu0 %v430_v48  ;;  %807 = vmatmul.mubr.bf16.vlgmr.msra.gmra.mrb[16].mxu1 %v432_v49  ;;  %v406_v6 = vmax.f32 %v297_v54, 0.0 }
 0x101   :  { %v409_v4 = vmax.f32 %v372_v59, 0.0  ;;  %v303_v5 = vadd.f32 %v302_v2, %v1491_v22  ;;  %v376_v1 = vadd.f32 %v375_v3, %v1493_v23  ;;  %v407_v9 = vmax.f32 %v299_v58, 0.0 }
 0x102   :  { %v410_v7 = vmax.f32 %v301_v63, 0.0  ;;  %v412_v8 = vmax.f32 %v374_v0, 0.0 }
 0x103   :  { %v411_v10 = vmax.f32 %v303_v5, 0.0  ;;  %v413_v11 = vmax.f32 %v376_v1, 0.0 }
 0x104   :  { %v434_v12 = vpack.c.bf16 %v410_v7, %v406_v6  ;;  %v436_v13 = vpack.c.bf16 %v412_v8, %v408_v62 }
 0x105   :  { %v435_v14 = vpack.c.bf16 %v411_v10, %v407_v9  ;;  %v437_v15 = vpack.c.bf16 %v413_v11, %v409_v4  ;;  %v306_v16 = vpop.f32.mrb[8].mxu0  ;;  %v379_v17 = vpop.f32.mrb[8].mxu1 }
 0x106   :  { %v307_v18 = vadd.f32 %v306_v16, %v1487_v20  ;;  %v380_v19 = vadd.f32 %v379_v17, %v1489_v21  ;;  %v308_v24 = vpop.f32.mrb[9].mxu0  ;;  %v381_v25 = vpop.f32.mrb[9].mxu1 }
 0x107   :  { %v309_v26 = vadd.f32 %v308_v24, %v1491_v22  ;;  %v382_v27 = vadd.f32 %v381_v25, %v1493_v23  ;;  %v310_v28 = vpop.f32.mrb[10].mxu0  ;;  %v383_v29 = vpop.f32.mrb[10].mxu1  ;;  %749 = vmatprep.mubr.bf16.mxu0 %v435_v14  ;;  %814 = vmatprep.mubr.bf16.mxu1 %v437_v15 }
 0x108   :  { %v416_v30 = vmax.f32 %v380_v19, 0.0  ;;  %v311_v31 = vadd.f32 %v310_v28, %v1487_v20  ;;  %v384_v32 = vadd.f32 %v383_v29, %v1489_v21  ;;  %v312_v33 = vpop.f32.mrb[11].mxu0  ;;  %v385_v34 = vpop.f32.mrb[11].mxu1  ;;  %750 = vmatmul.mubr.bf16.gmra.mrb[20].mxu0 %v434_v12  ;;  %815 = vmatmul.mubr.bf16.gmra.mrb[20].mxu1 %v436_v13  ;;  %v414_v38 = vmax.f32 %v307_v18, 0.0 }
 0x109   :  { %v417_v35 = vmax.f32 %v382_v27, 0.0  ;;  %v313_v36 = vadd.f32 %v312_v33, %v1491_v22  ;;  %v386_v37 = vadd.f32 %v385_v34, %v1493_v23  ;;  %v415_v41 = vmax.f32 %v309_v26, 0.0 }
 0x10a   :  { %v418_v39 = vmax.f32 %v311_v31, 0.0  ;;  %v420_v40 = vmax.f32 %v384_v32, 0.0 }
 0x10b   :  { %v419_v42 = vmax.f32 %v313_v36, 0.0  ;;  %v421_v43 = vmax.f32 %v386_v37, 0.0 }
 0x10c   :  { %v438_v44 = vpack.c.bf16 %v418_v39, %v414_v38  ;;  %v440_v45 = vpack.c.bf16 %v420_v40, %v416_v30 }
 0x10d   :  { %v439_v46 = vpack.c.bf16 %v419_v42, %v415_v41  ;;  %v441_v47 = vpack.c.bf16 %v421_v43, %v417_v35  ;;  %v316_v48 = vpop.f32.mrb[12].mxu0  ;;  %v389_v49 = vpop.f32.mrb[12].mxu1 }
 0x10e   :  { %v317_v50 = vadd.f32 %v316_v48, %v1487_v20  ;;  %v390_v51 = vadd.f32 %v389_v49, %v1489_v21  ;;  %v318_v52 = vpop.f32.mrb[13].mxu0  ;;  %v391_v53 = vpop.f32.mrb[13].mxu1 }
 0x10f   :  { %v319_v54 = vadd.f32 %v318_v52, %v1491_v22  ;;  %v392_v55 = vadd.f32 %v391_v53, %v1493_v23  ;;  %v320_v56 = vpop.f32.mrb[14].mxu0  ;;  %v393_v57 = vpop.f32.mrb[14].mxu1  ;;  %757 = vmatprep.mubr.bf16.mxu0 %v439_v46  ;;  %822 = vmatprep.mubr.bf16.mxu1 %v441_v47 }
 0x110   :  { %v424_v58 = vmax.f32 %v390_v51, 0.0  ;;  %v321_v59 = vadd.f32 %v320_v56, %v1487_v20  ;;  %v394_v60 = vadd.f32 %v393_v57, %v1489_v21  ;;  %v322_v61 = vpop.f32.mrb[15].mxu0  ;;  %v395_v62 = vpop.f32.mrb[15].mxu1  ;;  %758 = vmatmul.mubr.bf16.gmra.mrb[24].mxu0 %v438_v44  ;;  %823 = vmatmul.mubr.bf16.gmra.mrb[24].mxu1 %v440_v45  ;;  %v422_v3 = vmax.f32 %v317_v50, 0.0 }
 0x111   :  { %v425_v63 = vmax.f32 %v392_v55, 0.0  ;;  %v323_v0 = vadd.f32 %v322_v61, %v1491_v22  ;;  %v396_v2 = vadd.f32 %v395_v62, %v1493_v23  ;;  %v423_v1 = vmax.f32 %v319_v54, 0.0  ;;  %v1530_v22 = vld [vmem:[%s1577_s5] ss:$0 sm:$0xff] }
 0x112   :  { %v426_v4 = vmax.f32 %v321_v59, 0.0  ;;  %v428_v5 = vmax.f32 %v394_v60, 0.0 }
 0x113   :  { %v427_v6 = vmax.f32 %v323_v0, 0.0  ;;  %v429_v7 = vmax.f32 %v396_v2, 0.0 }
 0x114   :  { %v442_v8 = vpack.c.bf16 %v426_v4, %v422_v3  ;;  %v444_v9 = vpack.c.bf16 %v428_v5, %v424_v58 }
 0x115   :  { %v443_v20 = vpack.c.bf16 %v427_v6, %v423_v1  ;;  %v445_v10 = vpack.c.bf16 %v429_v7, %v425_v63 }
 0x117   :  { %765 = vmatprep.mubr.bf16.mxu0 %v443_v20  ;;  %830 = vmatprep.mubr.bf16.mxu1 %v445_v10 }
 0x118   :  { %766 = vmatmul.mubr.bf16.gmra.mrb[28].mxu0 %v442_v8  ;;  %831 = vmatmul.mubr.bf16.gmra.mrb[28].mxu1 %v444_v9 }
 0x1d3   :  { %v1058_v21 = vpop.f32.mrb[16].mxu0  ;;  %v1098_v11 = vpop.f32.mrb[16].mxu1 }
 0x1d4   :  { %v1059_v23 = vpop.f32.mrb[17].mxu0  ;;  %v1099_v12 = vpop.f32.mrb[17].mxu1 }
 0x1d5   :  { %v1060_v13 = vadd.f32 %v1059_v23, %v1058_v21  ;;  %v1100_v14 = vadd.f32 %v1099_v12, %v1098_v11  ;;  %v1061_v15 = vpop.f32.mrb[18].mxu0  ;;  %v1101_v16 = vpop.f32.mrb[18].mxu1 }
 0x1d6   :  { %v1062_v17 = vpop.f32.mrb[19].mxu0  ;;  %v1102_v18 = vpop.f32.mrb[19].mxu1 }
 0x1d7   :  { %v744_v19 = vadd.f32 %v1060_v13, %v1530_v22  ;;  %v1063_v24 = vadd.f32 %v1062_v17, %v1061_v15  ;;  %v1103_v25 = vadd.f32 %v1102_v18, %v1101_v16 }
 0x1d9   :  { %v747_v26 = vadd.f32 %v1063_v24, %v1530_v22  ;;  %v1534_v27 = vadd.f32 %v1100_v14, %v744_v19 }
 0x1db   :  { %v1064_v28 = vpop.f32.mrb[20].mxu0  ;;  %v1104_v29 = vpop.f32.mrb[20].mxu1  ;;  %v839_v30 = vmul.f32 %v1534_v27, %v1534_v27  ;;  %v1538_v31 = vadd.f32 %v1103_v25, %v747_v26 }
 0x1dc   :  { %v1065_v32 = vpop.f32.mrb[21].mxu0  ;;  %v1105_v33 = vpop.f32.mrb[21].mxu1 }
 0x1dd   :  { %v1066_v34 = vadd.f32 %v1065_v32, %v1064_v28  ;;  %v1106_v35 = vadd.f32 %v1105_v33, %v1104_v29  ;;  %v1067_v36 = vpop.f32.mrb[22].mxu0  ;;  %v1107_v37 = vpop.f32.mrb[22].mxu1  ;;  %847 = vadd.xlane.f32.xlu0 %v839_v30  ;;  %v840_v38 = vmul.f32 %v1538_v31, %v1538_v31 }
 0x1de   :  { %v1068_v39 = vpop.f32.mrb[23].mxu0  ;;  %v1108_v40 = vpop.f32.mrb[23].mxu1 }
 0x1df   :  { %v752_v41 = vadd.f32 %v1066_v34, %v1530_v22  ;;  %v1069_v42 = vadd.f32 %v1068_v39, %v1067_v36  ;;  %v1109_v43 = vadd.f32 %v1108_v40, %v1107_v37  ;;  %849 = vadd.xlane.f32.xlu1 %v840_v38 }
 0x1e1   :  { %v1543_v44 = vadd.f32 %v1106_v35, %v752_v41  ;;  %v755_v45 = vadd.f32 %v1069_v42, %v1530_v22 }
 0x1e3   :  { %v1546_v46 = vadd.f32 %v1109_v43, %v755_v45  ;;  %v1070_v47 = vpop.f32.mrb[24].mxu0  ;;  %v1110_v48 = vpop.f32.mrb[24].mxu1  ;;  %v841_v15 = vmul.f32 %v1543_v44, %v1543_v44 }
 0x1e4   :  { %v1071_v49 = vpop.f32.mrb[25].mxu0  ;;  %v1111_v50 = vpop.f32.mrb[25].mxu1 }
 0x1e5   :  { %v1072_v51 = vadd.f32 %v1071_v49, %v1070_v47  ;;  %v1112_v52 = vadd.f32 %v1111_v50, %v1110_v48  ;;  %v1073_v53 = vpop.f32.mrb[26].mxu0  ;;  %v1113_v54 = vpop.f32.mrb[26].mxu1  ;;  %v842_v17 = vmul.f32 %v1546_v46, %v1546_v46 }
 0x1e6   :  { %v1074_v55 = vpop.f32.mrb[27].mxu0  ;;  %v1114_v56 = vpop.f32.mrb[27].mxu1 }
 0x1e7   :  { %v760_v57 = vadd.f32 %v1072_v51, %v1530_v22  ;;  %v1075_v58 = vadd.f32 %v1074_v55, %v1073_v53  ;;  %v1115_v59 = vadd.f32 %v1114_v56, %v1113_v54 }
 0x1e9   :  { %v825_v60 = vadd.f32 %v1112_v52, %v760_v57  ;;  %v763_v61 = vadd.f32 %v1075_v58, %v1530_v22 }
 0x1eb   :  { %v828_v62 = vadd.f32 %v1115_v59, %v763_v61  ;;  %v1076_v63 = vpop.f32.mrb[28].mxu0  ;;  %v1116_v0 = vpop.f32.mrb[28].mxu1  ;;  %v843_v2 = vmul.f32 %v825_v60, %v825_v60 }
 0x1ec   :  { %v1077_v3 = vpop.f32.mrb[29].mxu0  ;;  %v1117_v4 = vpop.f32.mrb[29].mxu1 }
 0x1ed   :  { %v1078_v5 = vadd.f32 %v1077_v3, %v1076_v63  ;;  %v1118_v1 = vadd.f32 %v1117_v4, %v1116_v0  ;;  %v1079_v6 = vpop.f32.mrb[30].mxu0  ;;  %v1119_v7 = vpop.f32.mrb[30].mxu1  ;;  %855 = vadd.xlane.f32.xlu0 %v843_v2  ;;  %v844_v11 = vmul.f32 %v828_v62, %v828_v62 }
 0x1ee   :  { %v1080_v8 = vpop.f32.mrb[31].mxu0  ;;  %v1120_v9 = vpop.f32.mrb[31].mxu1 }
 0x1ef   :  { %v768_v20 = vadd.f32 %v1078_v5, %v1530_v22  ;;  %v1081_v10 = vadd.f32 %v1080_v8, %v1079_v6  ;;  %v1121_v21 = vadd.f32 %v1120_v9, %v1119_v7 }
 0x1f1   :  { %v833_v23 = vadd.f32 %v1118_v1, %v768_v20  ;;  %v771_v12 = vadd.f32 %v1081_v10, %v1530_v22  ;;  %857 = vadd.xlane.f32.xlu0 %v844_v11 }
 0x1f3   :  { %v836_v13 = vadd.f32 %v1121_v21, %v771_v12  ;;  %v845_v14 = vmul.f32 %v833_v23, %v833_v23 }
 0x1f5   :  { %859 = vadd.xlane.f32.xlu1 %v845_v14  ;;  %851 = vadd.xlane.f32.xlu0 %v841_v15  ;;  %v846_v16 = vmul.f32 %v836_v13, %v836_v13 }
 0x1f9   :  { %861 = vadd.xlane.f32.xlu1 %v846_v16 }
 0x1fd   :  { %853 = vadd.xlane.f32.xlu1 %v842_v17 }
 0x26a   :  { %v848_v18 = vpop.xlane.xlu0 %847 }
 0x26b   :  { %v863_v19 = vmax.f32 %v848_v18, 1e-16 }
 0x26c   :  { %v850_v24 = vpop.xlane.xlu1 %849 }
 0x26d   :  { %1203 = vrsqrt.f32 %v863_v19  ;;  %v864_v25 = vmax.f32 %v850_v24, 1e-16 }
 0x26f   :  { %1205 = vrsqrt.f32 %v864_v25 }
 0x277   :  { %v1204_v22 = vpop.eup %1203 }
 0x278   :  { %v879_v28 = vmul.f32 %v1204_v22, %v1534_v27 }
 0x279   :  { %v1206_v26 = vpop.eup %1205 }
 0x27a   :  { %v880_v29 = vmul.f32 %v1206_v26, %v1538_v31  ;;  %v856_v30 = vpop.xlane.xlu0 %855 }
 0x27b   :  { %v867_v32 = vmax.f32 %v856_v30, 1e-16 }
 0x27c   :  { %v1023_v33 = vpack.c.bf16 %v880_v29, %v879_v28 }
 0x27d   :  { %1207 = vrsqrt.f32 %v867_v32 }
 0x27e   :  { %1024 = vst [vmem:[%s1578_s6] sm:$0xff] %v1023_v33   ;;  %v858_v34 = vpop.xlane.xlu0 %857 }
 0x27f   :  { %v868_v35 = vmax.f32 %v858_v34, 1e-16 }
 0x281   :  { %1209 = vrsqrt.f32 %v868_v35 }
 0x282   :  { %v860_v36 = vpop.xlane.xlu1 %859  ;;  %v852_v38 = vpop.xlane.xlu0 %851 }
 0x283   :  { %v869_v37 = vmax.f32 %v860_v36, 1e-16  ;;  %v865_v27 = vmax.f32 %v852_v38, 1e-16 }
 0x285   :  { %1211 = vrsqrt.f32 %v869_v37 }
 0x286   :  { %v862_v39 = vpop.xlane.xlu1 %861 }
 0x287   :  { %v1208_v40 = vpop.eup %1207  ;;  %v870_v41 = vmax.f32 %v862_v39, 1e-16 }
 0x288   :  { %v883_v31 = vmul.f32 %v1208_v40, %v825_v60 }
 0x289   :  { %1213 = vrsqrt.f32 %v870_v41 }
 0x28a   :  { %v854_v42 = vpop.xlane.xlu1 %853  ;;  %1215 = vrsqrt.f32 %v865_v27  ;;  %v907_v48 = vmul.f32 5.0, %v883_v31 }
 0x28b   :  { %v1210_v43 = vpop.eup %1209  ;;  %v866_v45 = vmax.f32 %v854_v42, 1e-16 }
 0x28c   :  { %v884_v47 = vmul.f32 %v1210_v43, %v828_v62 }
 0x28d   :  { %1217 = vrsqrt.f32 %v866_v45 }
 0x28e   :  { %v908_v49 = vmul.f32 5.0, %v884_v47 }
 0x28f   :  { %v1212_v50 = vpop.eup %1211 }
 0x290   :  { %v1033_v51 = vpack.c.bf16 %v908_v49, %v907_v48  ;;  %v885_v52 = vmul.f32 %v1212_v50, %v833_v23 }
 0x292   :  { %1034 = vst [vmem:[%s1579_s7] sm:$0xff] %v1033_v51   ;;  %v909_v56 = vmul.f32 5.0, %v885_v52 }
 0x293   :  { %v1214_v53 = vpop.eup %1213 }
 0x294   :  { %v886_v54 = vmul.f32 %v1214_v53, %v836_v13  ;;  %v1216_v55 = vpop.eup %1215 }
 0x295   :  { %v881_v59 = vmul.f32 %v1216_v55, %v1543_v44 }
 0x296   :  { %v910_v57 = vmul.f32 5.0, %v886_v54 }
 0x297   :  { %v1218_v58 = vpop.eup %1217 }
 0x298   :  { %v1038_v60 = vpack.c.bf16 %v910_v57, %v909_v56  ;;  %v882_v61 = vmul.f32 %v1218_v58, %v1546_v46 }
 0x29a   :  { %1041 = vst [vmem:[%s1579_s7 + $0x8] sm:$0xff] %v1038_v60   ;;  %v1028_v62 = vpack.c.bf16 %v882_v61, %v881_v59 }
 0x29c   :  { %1040 = vst [vmem:[%s1578_s6 + $0x8] sm:$0xff] %v1028_v62  }

</bundles_post_ra>
